<compile_context>
chip_gen: v7x
topology: tpu7x:2x2x1
jax: 0.10.0
libtpu: 0.0.40
codegen_flags: <defaults>
</compile_context>

<pallas_src>
import functools

import jax
import jax.numpy as jnp
from jax import lax
from jax.experimental import pallas as pl
from jax.experimental.pallas import tpu as pltpu

_NEG_CONST = 0.5945275813408382
_POS_CONST = 1.0 / 0.32447699714575207


def _lsc_ce_tile_kernel(x_ref, tgt_ref, out_ref, *, eps, ignore_index, megacore):
    step = pl.program_id(0)
    x = x_ref[...].astype(jnp.float32)          # [TN, C] logits, upcast on vreg
    tgt = tgt_ref[...]                          # [TN, 1] int32
    TN, C = x.shape

    # ---- log-softmax pieces (log_preds never materialized) ----
    row_max = jnp.max(x, axis=-1, keepdims=True)                # [TN, 1]
    z = x - row_max                                             # [TN, C]
    lse = jnp.log(jnp.sum(jnp.exp(z), axis=-1, keepdims=True))  # [TN, 1]
    sum_z = jnp.sum(z, axis=-1, keepdims=True)                  # [TN, 1]
    # -sum_c log_preds = C*lse - sum_c z  (per row), summed over tile rows.
    neg_sum_lp = jnp.sum(C * lse - sum_z)                       # scalar

    # ---- NLL partials: nll_per = lse - z[target] = -log_pred[target] ----
    col_iota = lax.broadcasted_iota(jnp.int32, (TN, C), 1)
    onehot = col_iota == tgt                                    # [TN, C]
    z_t = jnp.sum(jnp.where(onehot, z, 0.0), axis=-1, keepdims=True)
    nll_per = lse - z_t                                         # [TN, 1]
    valid = (tgt != ignore_index).astype(jnp.float32)           # [TN, 1]
    nll_sum = jnp.sum(nll_per * valid)
    valid_sum = jnp.sum(valid)

    # lane-dense (8,128) partial block: lanes 0..3 of sublane 0 carry
    # (neg_sum_lp, nll_sum, valid_sum, corr_sum).
    lane = lax.broadcasted_iota(jnp.int32, (8, 128), 1)
    sub = lax.broadcasted_iota(jnp.int32, (8, 128), 0)
    base = jnp.where(
        sub == 0,
        jnp.where(
            lane == 0, neg_sum_lp,
            jnp.where(lane == 1, nll_sum,
                      jnp.where(lane == 2, valid_sum, 0.0))),
        0.0)

    if megacore:
        # one partial block per tile (combined in the wrapper)
        out_ref[...] = base
    else:
        # single resident output block accumulated across the grid
        @pl.when(step == 0)
        def _():
            out_ref[...] = jnp.zeros_like(out_ref)
        out_ref[...] += base

    # ---- correction term: only global rows i in [0, C) contribute.
    # Gate the argmax + where-chain so every tile past the first
    # ceil(C/TN) skips ~2 [TN,C] VPU passes and one XLU reduce.
    @pl.when(step * TN < C)
    def _():
        is_max = x == row_max
        labels_hat = jnp.min(
            jnp.where(is_max, col_iota, C), axis=-1, keepdims=True)  # [TN, 1]
        lt_sum = labels_hat + tgt
        abs_sub = jnp.abs(labels_hat - tgt)
        contrib = jnp.where(
            lt_sum == 0,
            0.0,
            jnp.where(
                lt_sum == 1,
                jnp.where(abs_sub == 1, 0.0, -eps * _NEG_CONST),
                eps * _POS_CONST))
        global_row = lax.broadcasted_iota(jnp.int32, (TN, 1), 0) + step * TN
        corr_sum = jnp.sum(jnp.where(global_row < C, contrib, 0.0))
        out_ref[...] += jnp.where((sub == 0) & (lane == 3), corr_sum, 0.0)


def _pick_tn(N, C, itemsize, sublane_pack, target_bytes, min_tiles):
    """Largest divisor of N, sublane-aligned, whose logits block is ~target_bytes."""
    c_pad = max(128, ((C + 127) // 128) * 128)       # lane padding of the block
    row_bytes = c_pad * itemsize
    cap = (target_bytes // row_bytes) // sublane_pack * sublane_pack
    cap = max(sublane_pack, cap)
    if min_tiles > 1:
        cap = min(cap, max(sublane_pack,
                           (N // min_tiles) // sublane_pack * sublane_pack))
    cap = min(cap, N)
    best = None
    t = sublane_pack
    while t <= cap:
        if N % t == 0:
            best = t
        t += sublane_pack
    return best if best is not None else N           # full-array block fallback


def label_smoothing_correction_ce(output, target, eps=0.1, ignore_index=-100,
                                  tn=None, megacore=False,
                                  target_block_bytes=2 << 20,
                                  vmem_limit_bytes=48 << 20):
    """output: [N, C] logits (any float dtype); target: [N] int class ids.

    megacore=False (default, v5e/v6e): grid axis "arbitrary", partials
      accumulated in a single resident (8,128) output block (no per-tile
      HBM writeback, no wrapper reduction).
    megacore=True (v7x, 2 TensorCores): grid axis "parallel" with one
      (8,128) partial block per tile, combined in the wrapper; >= 2 tiles.
    """
    N, C = output.shape
    # The module's correction loop indexes samples 0..C-1, so it requires N>=C.
    assert N >= C, "LabelSmoothingCorrectionCrossEntropy requires N >= C"

    itemsize = jnp.dtype(output.dtype).itemsize
    sublane_pack = max(8, 32 // itemsize)    # 8 for f32, 16 for bf16, 32 for i8/fp8

    if tn is None:
        tn = _pick_tn(N, C, itemsize, sublane_pack, target_block_bytes,
                      min_tiles=2 if megacore else 1)
    assert N % tn == 0, "row tile must divide N"
    assert tn % sublane_pack == 0 or tn == N, (
        f"row tile must be a multiple of {sublane_pack} rows for dtype "
        f"{output.dtype} (or equal to N)")
    num_tiles = N // tn

    tgt2d = target.reshape(N, 1).astype(jnp.int32)
    kernel = functools.partial(_lsc_ce_tile_kernel, eps=eps,
                               ignore_index=ignore_index, megacore=megacore)

    in_specs = [
        pl.BlockSpec((tn, C), lambda i: (i, 0)),
        pl.BlockSpec((tn, 1), lambda i: (i, 0)),
    ]
    if megacore:
        out_shape = jax.ShapeDtypeStruct((num_tiles * 8, 128), jnp.float32)
        out_specs = pl.BlockSpec((8, 128), lambda i: (i, 0))
        dims = ("parallel",)
    else:
        out_shape = jax.ShapeDtypeStruct((8, 128), jnp.float32)
        out_specs = pl.BlockSpec((8, 128), lambda i: (0, 0))
        dims = ("arbitrary",)

    partials = pl.pallas_call(
        kernel,
        out_shape=out_shape,
        grid=(num_tiles,),
        in_specs=in_specs,
        out_specs=out_specs,
        compiler_params=pltpu.CompilerParams(
            dimension_semantics=dims,
            vmem_limit_bytes=vmem_limit_bytes),
    )(output, tgt2d)                       # native dtype in; no wrapper f32 copy

    # Non-zero entries live only in sublane-0 lanes 0..3 of each tile block.
    sums = jnp.sum(partials, axis=0)       # [128]
    loss_smooth = sums[0] / N              # mean over batch of -sum(log_preds)
    nll = sums[1] / sums[2]                # nll_loss 'mean' (ignore_index aware)
    corr = sums[3] / C
    return loss_smooth * eps / C + (1.0 - eps) * nll + corr


def _reference(output, target, eps=0.1, ignore_index=-100):
    """Pure-JAX reference mirroring the PyTorch forward (reduction='mean')."""
    N, C = output.shape
    log_preds = jax.nn.log_softmax(output.astype(jnp.float32), axis=-1)
    loss = jnp.mean(-jnp.sum(log_preds, axis=-1))
    labels_hat = jnp.argmax(output, axis=1)
    lt_sum = labels_hat + target
    abs_sub = jnp.abs(labels_hat - target)
    corr = 0.0
    for i in range(C):
        corr = corr + jnp.where(
            lt_sum[i] == 0,
            0.0,
            jnp.where(
                lt_sum[i] == 1,
                jnp.where(abs_sub[i] == 1, 0.0, -eps * _NEG_CONST),
                eps * _POS_CONST))
    corr = corr / C
    valid = (target != ignore_index).astype(jnp.float32)
    nll_per = -jnp.take_along_axis(log_preds, target[:, None], axis=1)[:, 0]
    nll = jnp.sum(nll_per * valid) / jnp.sum(valid)
    return loss * eps / C + (1 - eps) * nll + corr


if __name__ == "__main__":
    key = jax.random.PRNGKey(0)
    k_logits, k_tgt = jax.random.split(key)
    N, C = 16, 8  # N >= C required by the module's own correction loop
    output = jax.random.normal(k_logits, (N, C), dtype=jnp.float32)
    target = jax.random.randint(k_tgt, (N,), 0, C, dtype=jnp.int32)

    ref = _reference(output, target)

    # Accumulator path ("arbitrary"), 2 grid steps -> exercises the pl.when
    # gate that skips argmax/correction on tile 1.
    loss_acc = jax.block_until_ready(
        label_smoothing_correction_ce(output, target, tn=8))
    # Megacore path ("parallel") with per-tile partial blocks.
    loss_par = jax.block_until_ready(
        label_smoothing_correction_ce(output, target, tn=8, megacore=True))
    # Default (auto) tile selection: single full-array tile at this shape.
    loss_def = jax.block_until_ready(
        label_smoothing_correction_ce(output, target))

    for got in (loss_acc, loss_par, loss_def):
        assert jnp.allclose(got, ref, atol=1e-5, rtol=1e-5), (got, ref)
    print("KERNEL_OK")
</pallas_src>

<mosaic_0001>
module attributes {stable_mosaic.version = 11 : i64} {
  func.func @_lsc_ce_tile_kernel(%arg0: i32, %arg1: memref<8x8xf32, #tpu.memory_space<vmem>>, %arg2: memref<8x1xi32, #tpu.memory_space<vmem>>, %arg3: memref<8x128xf32, #tpu.memory_space<vmem>>) attributes {dimension_semantics = [#tpu.dimension_semantics<arbitrary>], iteration_bounds = array<i64: 2>, scalar_prefetch = 0 : i64, scratch_operands = 0 : i64, tpu.core_type = #tpu.core_type<tc>, window_params = [{transform_indices = @transform_0, window_bounds = array<i64: 8, 8>}, {transform_indices = @transform_1, window_bounds = array<i64: 8, 1>}, {pipeline_mode = #tpu.pipeline_mode<synchronous>, transform_indices = @transform_2, window_bounds = array<i64: 8, 128>}]} {
    %c0 = arith.constant 0 : index
    %c0_0 = arith.constant 0 : index
    %0 = vector.load %arg1[%c0, %c0_0] : memref<8x8xf32, #tpu.memory_space<vmem>>, vector<8x8xf32>
    %c0_1 = arith.constant 0 : index
    %c0_2 = arith.constant 0 : index
    %1 = vector.load %arg2[%c0_1, %c0_2] : memref<8x1xi32, #tpu.memory_space<vmem>>, vector<8x1xi32>
    %cst = arith.constant dense<0xFF800000> : vector<8xf32>
    %2 = vector.multi_reduction <maximumf>, %0, %cst [1] : vector<8x8xf32> to vector<8xf32>
    %3 = vector.shape_cast %2 : vector<8xf32> to vector<8x1xf32>
    %4 = vector.broadcast %3 : vector<8x1xf32> to vector<8x8xf32>
    %5 = arith.subf %0, %4 : vector<8x8xf32>
    %6 = math.exp %5 : vector<8x8xf32>
    %cst_3 = arith.constant dense<0.000000e+00> : vector<8xf32>
    %7 = vector.multi_reduction <add>, %6, %cst_3 [1] : vector<8x8xf32> to vector<8xf32>
    %8 = vector.shape_cast %7 : vector<8xf32> to vector<8x1xf32>
    %9 = math.log %8 : vector<8x1xf32>
    %cst_4 = arith.constant dense<0.000000e+00> : vector<8xf32>
    %10 = vector.multi_reduction <add>, %5, %cst_4 [1] : vector<8x8xf32> to vector<8xf32>
    %11 = vector.shape_cast %10 : vector<8xf32> to vector<8x1xf32>
    %cst_5 = arith.constant 8.000000e+00 : f32
    %12 = vector.broadcast %cst_5 : f32 to vector<8x1xf32>
    %13 = arith.mulf %12, %9 : vector<8x1xf32>
    %14 = arith.subf %13, %11 : vector<8x1xf32>
    %15 = vector.shape_cast %14 : vector<8x1xf32> to vector<1x8x1xf32>
    %cst_6 = arith.constant dense<0.000000e+00> : vector<1xf32>
    %16 = vector.multi_reduction <add>, %15, %cst_6 [1, 2] : vector<1x8x1xf32> to vector<1xf32>
    %17 = vector.shape_cast %16 : vector<1xf32> to vector<1x1x1xf32>
    %18 = vector.extract %17[0, 0, 0] : f32 from vector<1x1x1xf32>
    %19 = tpu.iota {dimensions = array<i32: 1>} : vector<8x8xi32>
    %20 = vector.broadcast %1 : vector<8x1xi32> to vector<8x8xi32>
    %21 = arith.cmpi eq, %19, %20 : vector<8x8xi32>
    %cst_7 = arith.constant 0.000000e+00 : f32
    %22 = vector.broadcast %cst_7 : f32 to vector<8x8xf32>
    %23 = arith.select %21, %5, %22 : vector<8x8xi1>, vector<8x8xf32>
    %cst_8 = arith.constant dense<0.000000e+00> : vector<8xf32>
    %24 = vector.multi_reduction <add>, %23, %cst_8 [1] : vector<8x8xf32> to vector<8xf32>
    %25 = vector.shape_cast %24 : vector<8xf32> to vector<8x1xf32>
    %26 = arith.subf %9, %25 : vector<8x1xf32>
    %c-100_i32 = arith.constant -100 : i32
    %27 = vector.broadcast %c-100_i32 : i32 to vector<8x1xi32>
    %28 = arith.cmpi ne, %1, %27 : vector<8x1xi32>
    %29 = arith.extui %28 : vector<8x1xi1> to vector<8x1xi32>
    %30 = arith.sitofp %29 : vector<8x1xi32> to vector<8x1xf32>
    %31 = arith.mulf %26, %30 : vector<8x1xf32>
    %32 = vector.shape_cast %31 : vector<8x1xf32> to vector<1x8x1xf32>
    %cst_9 = arith.constant dense<0.000000e+00> : vector<1xf32>
    %33 = vector.multi_reduction <add>, %32, %cst_9 [1, 2] : vector<1x8x1xf32> to vector<1xf32>
    %34 = vector.shape_cast %33 : vector<1xf32> to vector<1x1x1xf32>
    %35 = vector.extract %34[0, 0, 0] : f32 from vector<1x1x1xf32>
    %36 = vector.shape_cast %30 : vector<8x1xf32> to vector<1x8x1xf32>
    %cst_10 = arith.constant dense<0.000000e+00> : vector<1xf32>
    %37 = vector.multi_reduction <add>, %36, %cst_10 [1, 2] : vector<1x8x1xf32> to vector<1xf32>
    %38 = vector.shape_cast %37 : vector<1xf32> to vector<1x1x1xf32>
    %39 = vector.extract %38[0, 0, 0] : f32 from vector<1x1x1xf32>
    %40 = tpu.iota {dimensions = array<i32: 1>} : vector<8x128xi32>
    %41 = tpu.iota {dimensions = array<i32: 0>} : vector<8x128xi32>
    %c0_i32 = arith.constant 0 : i32
    %42 = vector.broadcast %c0_i32 : i32 to vector<8x128xi32>
    %43 = arith.cmpi eq, %41, %42 : vector<8x128xi32>
    %c0_i32_11 = arith.constant 0 : i32
    %44 = vector.broadcast %c0_i32_11 : i32 to vector<8x128xi32>
    %45 = arith.cmpi eq, %40, %44 : vector<8x128xi32>
    %c1_i32 = arith.constant 1 : i32
    %46 = vector.broadcast %c1_i32 : i32 to vector<8x128xi32>
    %47 = arith.cmpi eq, %40, %46 : vector<8x128xi32>
    %c2_i32 = arith.constant 2 : i32
    %48 = vector.broadcast %c2_i32 : i32 to vector<8x128xi32>
    %49 = arith.cmpi eq, %40, %48 : vector<8x128xi32>
    %cst_12 = arith.constant 0.000000e+00 : f32
    %50 = vector.broadcast %39 : f32 to vector<8x128xf32>
    %51 = vector.broadcast %cst_12 : f32 to vector<8x128xf32>
    %52 = arith.select %49, %50, %51 : vector<8x128xi1>, vector<8x128xf32>
    %53 = vector.broadcast %35 : f32 to vector<8x128xf32>
    %54 = arith.select %47, %53, %52 : vector<8x128xi1>, vector<8x128xf32>
    %55 = vector.broadcast %18 : f32 to vector<8x128xf32>
    %56 = arith.select %45, %55, %54 : vector<8x128xi1>, vector<8x128xf32>
    %cst_13 = arith.constant 0.000000e+00 : f32
    %57 = vector.broadcast %cst_13 : f32 to vector<8x128xf32>
    %58 = arith.select %43, %56, %57 : vector<8x128xi1>, vector<8x128xf32>
    %c0_i32_14 = arith.constant 0 : i32
    %59 = arith.cmpi eq, %arg0, %c0_i32_14 : i32
    %60 = arith.extui %59 : i1 to i32
    %c0_i32_15 = arith.constant 0 : i32
    %61 = arith.cmpi ne, %60, %c0_i32_15 : i32
    scf.if %61 {
      %cst_22 = arith.constant 0.000000e+00 : f32
      %69 = vector.broadcast %cst_22 : f32 to vector<8x128xf32>
      %c0_23 = arith.constant 0 : index
      %c0_24 = arith.constant 0 : index
      %70 = vector.load %arg3[%c0_23, %c0_24] : memref<8x128xf32, #tpu.memory_space<vmem>>, vector<8x128xf32>
      tpu.vector_store %arg3[%c0_23, %c0_24], %69 {strides = array<i32>} : memref<8x128xf32, #tpu.memory_space<vmem>>, vector<8x128xf32>,
    } else {
    }
    %c0_16 = arith.constant 0 : index
    %c0_17 = arith.constant 0 : index
    %62 = vector.load %arg3[%c0_16, %c0_17] : memref<8x128xf32, #tpu.memory_space<vmem>>, vector<8x128xf32>
    %63 = arith.addf %62, %58 : vector<8x128xf32>
    %c0_18 = arith.constant 0 : index
    %c0_19 = arith.constant 0 : index
    %64 = vector.load %arg3[%c0_18, %c0_19] : memref<8x128xf32, #tpu.memory_space<vmem>>, vector<8x128xf32>
    tpu.vector_store %arg3[%c0_18, %c0_19], %63 {strides = array<i32>} : memref<8x128xf32, #tpu.memory_space<vmem>>, vector<8x128xf32>,
    %c8_i32 = arith.constant 8 : i32
    %65 = arith.muli %arg0, %c8_i32 : i32
    %c8_i32_20 = arith.constant 8 : i32
    %66 = arith.cmpi slt, %65, %c8_i32_20 : i32
    %67 = arith.extui %66 : i1 to i32
    %c0_i32_21 = arith.constant 0 : i32
    %68 = arith.cmpi ne, %67, %c0_i32_21 : i32
    scf.if %68 {
      %69 = vector.broadcast %3 : vector<8x1xf32> to vector<8x8xf32>
      %70 = arith.cmpf oeq, %0, %69 : vector<8x8xf32>
      %c8_i32_22 = arith.constant 8 : i32
      %71 = vector.broadcast %c8_i32_22 : i32 to vector<8x8xi32>
      %72 = arith.select %70, %19, %71 : vector<8x8xi1>, vector<8x8xi32>
      %cst_23 = arith.constant dense<2147483647> : vector<8xi32>
      %73 = vector.multi_reduction <minsi>, %72, %cst_23 [1] : vector<8x8xi32> to vector<8xi32>
      %74 = vector.shape_cast %73 : vector<8xi32> to vector<8x1xi32>
      %75 = arith.addi %74, %1 : vector<8x1xi32>
      %76 = arith.subi %74, %1 : vector<8x1xi32>
      %77 = math.absi %76 : vector<8x1xi32>
      %c0_i32_24 = arith.constant 0 : i32
      %78 = vector.broadcast %c0_i32_24 : i32 to vector<8x1xi32>
      %79 = arith.cmpi eq, %75, %78 : vector<8x1xi32>
      %c1_i32_25 = arith.constant 1 : i32
      %80 = vector.broadcast %c1_i32_25 : i32 to vector<8x1xi32>
      %81 = arith.cmpi eq, %75, %80 : vector<8x1xi32>
      %c1_i32_26 = arith.constant 1 : i32
      %82 = vector.broadcast %c1_i32_26 : i32 to vector<8x1xi32>
      %83 = arith.cmpi eq, %77, %82 : vector<8x1xi32>
      %cst_27 = arith.constant 0.000000e+00 : f32
      %cst_28 = arith.constant -0.0594527572 : f32
      %84 = vector.broadcast %cst_27 : f32 to vector<8x1xf32>
      %85 = vector.broadcast %cst_28 : f32 to vector<8x1xf32>
      %86 = arith.select %83, %84, %85 : vector<8x1xi1>, vector<8x1xf32>
      %cst_29 = arith.constant 0.30818826 : f32
      %87 = vector.broadcast %cst_29 : f32 to vector<8x1xf32>
      %88 = arith.select %81, %86, %87 : vector<8x1xi1>, vector<8x1xf32>
      %cst_30 = arith.constant 0.000000e+00 : f32
      %89 = vector.broadcast %cst_30 : f32 to vector<8x1xf32>
      %90 = arith.select %79, %89, %88 : vector<8x1xi1>, vector<8x1xf32>
      %91 = tpu.iota {dimensions = array<i32: 0>} : vector<8x1xi32>
      %c8_i32_31 = arith.constant 8 : i32
      %92 = arith.muli %arg0, %c8_i32_31 : i32
      %93 = vector.broadcast %92 : i32 to vector<8x1xi32>
      %94 = arith.addi %91, %93 : vector<8x1xi32>
      %c8_i32_32 = arith.constant 8 : i32
      %95 = vector.broadcast %c8_i32_32 : i32 to vector<8x1xi32>
      %96 = arith.cmpi slt, %94, %95 : vector<8x1xi32>
      %cst_33 = arith.constant 0.000000e+00 : f32
      %97 = vector.broadcast %cst_33 : f32 to vector<8x1xf32>
      %98 = arith.select %96, %90, %97 : vector<8x1xi1>, vector<8x1xf32>
      %99 = vector.shape_cast %98 : vector<8x1xf32> to vector<1x8x1xf32>
      %cst_34 = arith.constant dense<0.000000e+00> : vector<1xf32>
      %100 = vector.multi_reduction <add>, %99, %cst_34 [1, 2] : vector<1x8x1xf32> to vector<1xf32>
      %101 = vector.shape_cast %100 : vector<1xf32> to vector<1x1x1xf32>
      %102 = vector.extract %101[0, 0, 0] : f32 from vector<1x1x1xf32>
      %c0_35 = arith.constant 0 : index
      %c0_36 = arith.constant 0 : index
      %103 = vector.load %arg3[%c0_35, %c0_36] : memref<8x128xf32, #tpu.memory_space<vmem>>, vector<8x128xf32>
      %c0_i32_37 = arith.constant 0 : i32
      %104 = vector.broadcast %c0_i32_37 : i32 to vector<8x128xi32>
      %105 = arith.cmpi eq, %41, %104 : vector<8x128xi32>
      %c3_i32 = arith.constant 3 : i32
      %106 = vector.broadcast %c3_i32 : i32 to vector<8x128xi32>
      %107 = arith.cmpi eq, %40, %106 : vector<8x128xi32>
      %108 = arith.andi %105, %107 : vector<8x128xi1>
      %cst_38 = arith.constant 0.000000e+00 : f32
      %109 = vector.broadcast %102 : f32 to vector<8x128xf32>
      %110 = vector.broadcast %cst_38 : f32 to vector<8x128xf32>
      %111 = arith.select %108, %109, %110 : vector<8x128xi1>, vector<8x128xf32>
      %112 = arith.addf %103, %111 : vector<8x128xf32>
      %c0_39 = arith.constant 0 : index
      %c0_40 = arith.constant 0 : index
      %113 = vector.load %arg3[%c0_39, %c0_40] : memref<8x128xf32, #tpu.memory_space<vmem>>, vector<8x128xf32>
      tpu.vector_store %arg3[%c0_39, %c0_40], %112 {strides = array<i32>} : memref<8x128xf32, #tpu.memory_space<vmem>>, vector<8x128xf32>,
    } else {
    }
    return
  }
  func.func @transform_0(%arg0: i32) -> (i32, i32) {
    %c0_i32 = arith.constant 0 : i32
    %c0_i32_0 = arith.constant 0 : i32
    return %arg0, %c0_i32 : i32, i32
  }
  func.func @transform_1(%arg0: i32) -> (i32, i32) {
    %c0_i32 = arith.constant 0 : i32
    %c0_i32_0 = arith.constant 0 : i32
    return %arg0, %c0_i32 : i32, i32
  }
  func.func @transform_2(%arg0: i32) -> (i32, i32) {
    %c0_i32 = arith.constant 0 : i32
    %c0_i32_0 = arith.constant 0 : i32
    %c0_i32_1 = arith.constant 0 : i32
    return %c0_i32, %c0_i32_0 : i32, i32
  }
}

</mosaic_0001>

<bundles_post_ra>
// kernel: tpu_custom_call.1
= control target key start
LH: loop header
LB: loop body
LE: loop exit
PB: predicated region body
PF: predicated region fallthrough
CT: control target
= control target key end

     0   :  { %7 = vsyncpa [#allocation3], 0  ;;  %s447_s9 = smov 0   ;;  %s533_s0 = inlined_call_operand.vmem [shape: f32[16,8], index: 0, kind: input, shape index: {}]   ;;  %s534_s1 = inlined_call_operand.vmem [shape: s32[16,1], index: 1, kind: input, shape index: {}]   ;;  %s535_s2 = inlined_call_operand.hbm [shape: f32[8,128], index: 2, kind: output, shape index: {}]  }
   0x1 LB: > { %s453_s10 = sadd.s32 4294967295, %s425_s9   ;;  %p345_p0 = scmp.ge.s32.totalorder %s425_s9, 1  ;;  %s425_s9 = sphi %s447_s9, %s13_s9  }
   0x2   : > { %p116_p1 = scmp.lt.s32.totalorder %s425_s9, 3 }
   0x4   : > { %p117_p2 = pnand %p345_p0, %p116_p1 }
   0x5   : > { %p136_p3 = scmp.lt.s32.totalorder (!%p117_p2), %s453_s10, 1  ;;  %v427_v0 = vmov (!%p117_p2), 0   ;;  %vm146_vm0 = vcmask (!%p117_p2), 64512   ;;  %v174_v7 = vlaneseq (!%p117_p2)  ;;  %vm163_vm3 = vcmask (!%p117_p2), 7168   ;;  %p349_p4 = scmp.ne.s32.totalorder (!%p117_p2), %s453_s10, 0 }
   0x6   : > { %120 = sbr.rel (%p117_p2) target bundleno = 1099 (0x44b), region = 28  ;;  %384 = vset.pattern.permute.xlu0 (!%p117_p2), %v427_v0  ;;  %v428_v22 = vmov (!%p117_p2), 0.0  }
   0x7   : > { %v476_v8 = vand.u32 (!%p117_p2), 127, %v174_v7  ;;  %v486_v50 = vshrl.u32 (!%p117_p2), %v174_v7, 7 }
   0x9   : > { %vm214_vm4 = vcmp.eq.s32.totalorder (!%p117_p2), %v476_v8, 2  ;;  %vm213_vm5 = vcmp.eq.s32.totalorder (!%p117_p2), %v476_v8, 1  ;;  %vm212_vm6 = vcmp.eq.s32.totalorder (!%p117_p2), %v476_v8, 0  ;;  %vm211_vm7 = vcmp.eq.s32.totalorder (!%p117_p2), %v486_v50, 0 }
   0xd   : > { %s137_s11 = scalar_select %p136_p3, %s453_s10, 1 }
   0xe   : > { %v429_v58 = vmov (!%p349_p4), 0.0  }
   0xf   : > { %s346_s12 = sshll.u32 %s137_s11, 3  ;;  %226 = vst [vmem:[#allocation2] sm:$0xff] (!%p349_p4), %v429_v58 }
  0x10   : > { %s139_s15 = scalar_lea.vmem %s533_s0, %s346_s12  ;;  %s143_s18 = scalar_lea.vmem %s534_s1, %s346_s12 }
  0x11   : > { %v462_v1 = vld [vmem:[%s139_s15] sm:$0xff] }
  0x12   : > { %v147_v2 = vsel %vm146_vm0, %v462_v1, -inf  ;;  %v469_v3 = vld [vmem:[%s143_s18] sm:$0xff] }
  0x13   : > { %148 = vmax.xlane.f32.xlu0 %v147_v2  ;;  %vm185_vm2 = vcmp.ne.s32.totalorder %v469_v3, 4294967196 }
  0x14   : > { %v348_v23 = vsel %vm185_vm2, 1.0, %v428_v22 }
  0x15   : > { %v199_v28 = vsel %vm163_vm3, %v348_v23, 0.0 }
  0x29   : > { %177 = vperm.xlu0 %384, %v469_v3  }
  0xa0   : > { %v472_v4 = vpop.xlane.xlu0 %148 }
  0xa1   : > { %v150_v5 = vsub.f32 %v462_v1, %v472_v4 }
  0xa3   : > { %v151_v6 = vmul.f32 1.442695, %v150_v5  ;;  %v158_v14 = vsel %vm146_vm0, %v150_v5, 0.0 }
  0xa5   : > { %385 = vpow2.f32 %v151_v6 }
  0xa8   : > { %v178_v9 = vpop.permute.xlu0 %177 }
  0xa9   : > { %vm179_vm1 = vcmp.eq.s32.totalorder %v476_v8, %v178_v9 }
  0xaa   : > { %v180_v12 = vsel %vm179_vm1, %v150_v5, 0.0 }
  0xab   : > { %v181_v13 = vsel %vm146_vm0, %v180_v12, 0.0 }
  0xaf   : > { %v386_v10 = vpop.eup %385 }
  0xb0   : > { %v153_v11 = vsel %vm146_vm0, %v386_v10, 0.0 }
  0xb1   : > { %154 = vadd.xlane.f32.xlu1 %v153_v11 }
  0xb5   : > { %182 = vadd.xlane.f32.xlu1 %v181_v13 }
  0xb9   : > { %159 = vadd.xlane.f32.xlu1 %v158_v14 }
 0x13e   : > { %v155_v15 = vpop.xlane.xlu1 %154 }
 0x13f   : > { %387 = vlog2.f32 %v155_v15 }
 0x142   : > { %v183_v16 = vpop.xlane.xlu1 %182 }
 0x146   : > { %v160_v21 = vpop.xlane.xlu1 %159 }
 0x149   : > { %v388_v17 = vpop.eup %387 }
 0x14a   : > { %v157_v18 = vmul.f32 0.6931472, %v388_v17 }
 0x14c   : > { %v184_v19 = vsub.f32 %v157_v18, %v183_v16  ;;  %v161_v20 = vmul.f32 8.0, %v157_v18 }
 0x14e   : > { %v162_v24 = vsub.f32 %v161_v20, %v160_v21  ;;  %v188_v26 = vmul.f32 %v348_v23, %v184_v19 }
 0x150   : > { %v164_v25 = vsel %vm163_vm3, %v162_v24, 0.0  ;;  %v189_v27 = vsel %vm163_vm3, %v188_v26, 0.0 }
 0x151   : > { %165 = vadd.xlane.f32.xlu1 %v164_v25 }
 0x155   : > { %190 = vadd.xlane.f32.xlu1 %v189_v27 }
 0x159   : > { %200 = vadd.xlane.f32.xlu1 %v199_v28 }
 0x1de   : > { %v166_v29 = vpop.xlane.xlu1 %165 }
 0x1df   : > { %v167_v30 = vrot.slane %v166_v29, 4 }
 0x1e1   : > { %v168_v31 = vadd.f32 %v167_v30, %v166_v29 }
 0x1e2   : > { %v191_v32 = vpop.xlane.xlu1 %190 }
 0x1e3   : > { %v169_v33 = vrot.slane %v168_v31, 2  ;;  %v192_v34 = vrot.slane %v191_v32, 4 }
 0x1e5   : > { %v193_v35 = vadd.f32 %v192_v34, %v191_v32  ;;  %v170_v36 = vadd.f32 %v169_v33, %v168_v31 }
 0x1e6   : > { %v201_v37 = vpop.xlane.xlu1 %200 }
 0x1e7   : > { %v194_v38 = vrot.slane %v193_v35, 2  ;;  %v202_v39 = vrot.slane %v201_v37, 4  ;;  %v171_v40 = vrot.slane %v170_v36, 1 }
 0x1e9   : > { %v203_v41 = vadd.f32 %v202_v39, %v201_v37  ;;  %v172_v42 = vadd.f32 %v171_v40, %v170_v36  ;;  %v195_v43 = vadd.f32 %v194_v38, %v193_v35 }
 0x1eb   : > { %v204_v44 = vrot.slane %v203_v41, 2  ;;  %357 = vpush %v172_v42  ;;  %v196_v45 = vrot.slane %v195_v43, 1 }
 0x1ed   : > { %v205_v46 = vadd.f32 %v204_v44, %v203_v41  ;;  %v197_v47 = vadd.f32 %v196_v45, %v195_v43 }
 0x1ef   : > { %359 = vpush %v197_v47  ;;  %v206_v48 = vrot.slane %v205_v46, 1 }
 0x1f1   : > { %v207_v49 = vadd.f32 %v206_v48, %v205_v46 }
 0x1f3   : > { %361 = vpush %v207_v49 }
 0x21c   : > { %s358_s19 = spop %357 }
 0x21d   : > { %v219_v54 = vstv %s358_s19 }
 0x220   : > { %s360_s20 = spop %359 }
 0x221   : > { %v217_v52 = vstv %s360_s20 }
 0x223   : > { %225 = sbr.rel (%p349_p4) target bundleno = 554 (0x22a), region = 32 }
 0x224   : > { %s362_s21 = spop %361 }
 0x225   : > { %v215_v51 = vstv %s362_s21 }
 0x226   : > { %v216_v53 = vsel %vm214_vm4, %v215_v51, 0.0 }
 0x227   : > { %v218_v55 = vsel %vm213_vm5, %v217_v52, %v216_v53 }
 0x228   : > { %v220_v56 = vsel %vm212_vm6, %v219_v54, %v218_v55 }
 0x229   : > { %v221_v57 = vsel %vm211_vm7, %v220_v56, 0.0 }
 0x22a PF: > { %v227_v59 = vld [vmem:[#allocation2] sm:$0xff]  ;;  %s350_s22 = sshll.u32 %s453_s10, 3 }
 0x22b   : > { %v228_v60 = vadd.f32 %v227_v59, %v221_v57  ;;  %p351_p5 = scmp.ge.s32.totalorder %s350_s22, 8 }
 0x22c   : > { %vm235_vm8 = vcmp.eq.f32.partialorder (!%p351_p5), %v462_v1, %v472_v4  ;;  %v263_v4 = vstv (!%p351_p5), %s350_s22  ;;  %v430_v18 = vmov (!%p351_p5), -0.059452757   ;;  %vm278_vm14 = vcmp.eq.s32.totalorder (!%p351_p5), %v476_v8, 3 }
 0x22d   : > { %229 = vst [vmem:[#allocation2] sm:$0xff] %v228_v60  ;;  %234 = sbr.rel (%p351_p5) target bundleno = 1074 (0x432), region = 36  ;;  %v236_v61 = vsel (!%p351_p5), %vm235_vm8, %v476_v8, 8  ;;  %v264_v16 = vadd.s32 (!%p351_p5), %v263_v4, %v486_v50  ;;  %vm279_vm15 = vmand (!%p351_p5), %vm211_vm7, %vm278_vm14 }
 0x22e   : > { %v237_v62 = vsel (!%p351_p5), %vm146_vm0, %v236_v61, 2147483647 }
 0x22f   : > { %v239_v63 = vshra.s32 (!%p351_p5), %v237_v62, 16  ;;  %v238_v2 = vand.u32 (!%p351_p5), 65535, %v237_v62  ;;  %vm265_vm12 = vcmp.lt.s32.totalorder (!%p351_p5), %v264_v16, 8 }
 0x231   : > { %v241_v0 = vcvt.s32.f32 (!%p351_p5), %v239_v63  ;;  %v240_v5 = vcvt.s32.f32 (!%p351_p5), %v238_v2 }
 0x233   : > { %242 = vmin.xlane.f32.xlu0 (!%p351_p5), %v241_v0 }
 0x234   : > { %v277_v30 = vld [vmem:[#allocation2] sm:$0xff] }
 0x2c0   : > { %v243_v6 = vpop.xlane.xlu0 %242 }
 0x2c1   : > { %vm244_vm9 = vcmp.eq.f32.partialorder %v241_v0, %v243_v6  ;;  %v249_v9 = vcvt.f32.s32 %v243_v6 }
 0x2c2   : > { %v245_v7 = vsel %vm244_vm9, %v240_v5, inf }
 0x2c3   : > { %246 = vmin.xlane.f32.xlu0 %v245_v7  ;;  %v250_v11 = vshll.u32 %v249_v9, 16 }
 0x350   : > { %v247_v10 = vpop.xlane.xlu0 %246 }
 0x351   : > { %v248_v12 = vcvt.f32.s32 %v247_v10 }
 0x353   : > { %v251_v13 = vadd.s32 %v250_v11, %v248_v12 }
 0x355   : > { %v253_v1 = vsub.s32 %v251_v13, %v469_v3  ;;  %v252_v15 = vadd.s32 %v251_v13, %v469_v3 }
 0x357   : > { %v255_v14 = vsub.s32 0, %v253_v1  ;;  %vm258_vm11 = vcmp.eq.s32.totalorder %v252_v15, 1  ;;  %vm257_vm13 = vcmp.eq.s32.totalorder %v252_v15, 0 }
 0x359   : > { %v352_v17 = vmin.u32 %v255_v14, %v253_v1 }
 0x35b   : > { %vm259_vm10 = vcmp.eq.s32.totalorder %v352_v17, 1 }
 0x35c   : > { %v260_v19 = vsel %vm259_vm10, 0.0, %v430_v18 }
 0x35d   : > { %v261_v20 = vsel %vm258_vm11, %v260_v19, 0.30818826 }
 0x35e   : > { %v262_v21 = vsel %vm257_vm13, 0.0, %v261_v20 }
 0x35f   : > { %v266_v22 = vsel %vm265_vm12, %v262_v21, 0.0 }
 0x360   : > { %v267_v23 = vsel %vm163_vm3, %v266_v22, 0.0 }
 0x361   : > { %268 = vadd.xlane.f32.xlu1 %v267_v23 }
 0x3ee   : > { %v269_v24 = vpop.xlane.xlu1 %268 }
 0x3ef   : > { %v270_v25 = vrot.slane %v269_v24, 4 }
 0x3f1   : > { %v271_v26 = vadd.f32 %v270_v25, %v269_v24 }
 0x3f3   : > { %v272_v27 = vrot.slane %v271_v26, 2 }
 0x3f5   : > { %v273_v3 = vadd.f32 %v272_v27, %v271_v26 }
 0x3f7   : > { %v274_v28 = vrot.slane %v273_v3, 1 }
 0x3f9   : > { %v275_v29 = vadd.f32 %v274_v28, %v273_v3 }
 0x3fb   : > { %363 = vpush %v275_v29 }
 0x42c   : > { %s364_s23 = spop %363 }
 0x42d   : > { %v280_v31 = vstv %s364_s23 }
 0x42e   : > { %v281_v32 = vsel %vm279_vm15, %v280_v31, 0.0 }
 0x42f   : > { %v282_v33 = vadd.f32 %v281_v32, %v277_v30 }
 0x431   : > { %283 = vst [vmem:[#allocation2] sm:$0xff] %v282_v33 }
 0x432 PF: > { %p369_p6 = scmp.eq.s32.totalorder %s453_s10, 1  ;;  %s431_s24 = smov [#allocation2]  }
 0x433   : > { %s291_s25 = sshll.u32 %s431_s24, 4  ;;  %s292_s25 = int_to_ptr.vmem [resolvable:$true] %s291_s25 }
 0x434   : > { %s389_s26 = scalar_lea.vmem %s292_s25, 128  ;;  %p396_p10 = scmp.lt.s32.totalorder %s292_s25, %s292_s25 }
 0x435   : > { %p390_p7 = scmp.ne.s32.totalorder %s292_s25, %s389_s26  ;;  %p397_p11 = scmp.lt.s32.totalorder %s389_s26, %s389_s26 }
 0x437   : > { %p391_p8 = pnand %p390_p7, %p369_p6  ;;  %p398_p12 = por %p397_p11, %p396_p10 }
 0x439   : > { %p392_p9 = pneg %p391_p8 }
 0x43b   : > { %p399_p13 = pnand %p398_p12, %p392_p9 }
 0x43d   : > { %402 = shalt.err (!%p399_p13)
}
 0x43e   : > { %s403_s29 = scalar_lea.hbm %s535_s2, 128 }
 0x43f   : > { %p404_p0 = scmp.ne.s32.totalorder %s535_s2, %s403_s29  ;;  %p409_p3 = scmp.lt.u32.totalorder %s403_s29, %s535_s2 }
 0x441   : > { %p405_p1 = pnand %p404_p0, %p369_p6 }
 0x443   : > { %p406_p2 = pneg %p405_p1 }
 0x445   : > { %p411_p4 = pnand %p409_p3, %p406_p2 }
 0x447   : > { %414 = shalt.err (!%p411_p4)
}
 0x448   : > { %366 = dma.vmem_to_hbm [thread:$0]  (%p369_p6), %s292_s25, 128, %s535_s2, [#allocation3]  }
 0x449   : > { %420 = dma.done.wait (%p369_p6), [#allocation3], 128  }
 0x44a   : > { %422 = vsyncadd (%p369_p6), [#allocation3], 4294967168 }
 0x44b PF: > { %s13_s9 = sadd.s32 1, %s425_s9  }
 0x44c   : > { %p10_p5 = scmp.ge.s32.totalorder %s13_s9, 4  }
 0x44e   :  { %12 = sbr.rel (!%p10_p5) target bundleno = 1 (0x1), region = 66 }
 0x455   :  { %304 = vsyncpa [#allocation3], 1 }
 0x456   :  { %306 = vsyncpa [#allocation3 + $0x1], 1 }

</bundles_post_ra>
